<compile_context>
chip_gen: v7x
topology: tpu7x:2x2x1
jax: 0.10.0
libtpu: 0.0.40
codegen_flags: <defaults>
</compile_context>

<pallas_src>
import math

import jax
import jax.numpy as jnp
from jax.experimental import pallas as pl
from jax.experimental.pallas import tpu as pltpu


_FILL_VALUE = 42.0
_COL_CANDIDATES = (2048, 1024, 512, 256, 128)  # descending, all multiples of 128


def _masked_fill_kernel(x_ref, m_ref, o_ref):
    x = x_ref[...]
    fill = jnp.asarray(_FILL_VALUE, dtype=x.dtype)
    o_ref[...] = jnp.where(m_ref[...], fill, x + x)


def _round_up(v: int, m: int) -> int:
    return ((v + m - 1) // m) * m


def _choose_cols(total: int) -> int:
    """Largest lane-dense column count that divides `total` exactly (prefer
    one that also yields >= 8 rows for decent sublane utilization)."""
    divisors = [c for c in _COL_CANDIDATES if total % c == 0]
    for c in divisors:                 # descending
        if total // c >= 8:
            return c
    if divisors:
        return divisors[-1]            # smallest dividing candidate
    return 128                         # fallback: pad (< 128 elems) below


def _gen_tuned_limits():
    """(max elements per block, vmem_limit_bytes) tuned per TPU generation."""
    try:
        vmem = int(pltpu.get_tpu_info().vmem_capacity_bytes)
    except Exception:
        vmem = 128 << 20
    if vmem <= (80 << 20):
        # v7x: 64 MiB VMEM/TC, ~3.2 TB/s HBM -> bigger blocks amortize
        # per-step overhead.  ~2M elems/block, double-buffered f32 ~36 MiB.
        return 4096 * 512, 48 << 20
    # v5e / v6e: 128 MiB physical VMEM; ~1M elems/block (double-buffered f32
    # ~18 MiB) is already at the roofline knee.  Raise scoped VMEM past the
    # 16 MiB v5e default so this block size compiles everywhere.
    return 2048 * 512, 28 << 20


def masked_fill_double(tensor: jax.Array, mask: jax.Array) -> jax.Array:
    """masked_fill(tensor + tensor, mask, 42.0) via a Pallas TPU kernel."""
    assert tensor.shape == mask.shape, (
        "mask must match tensor shape (broadcast done by caller)")
    orig_shape = tensor.shape
    total = math.prod(orig_shape) if orig_shape else 1

    x_flat = tensor.reshape(-1)
    m_flat = mask.reshape(-1)
    if m_flat.dtype != jnp.bool_:
        m_flat = m_flat != 0           # only if caller passed a non-bool mask

    cols = _choose_cols(total)
    rows = pl.cdiv(total, cols)

    # Pad only when no candidate width divides the flat size (pad < 128 elems,
    # just enough to make the 2-D reshape legal).
    pad = rows * cols - total
    if pad:
        x_flat = jnp.pad(x_flat, (0, pad))
        m_flat = jnp.pad(m_flat, (0, pad))

    x2d = x_flat.reshape(rows, cols)
    m2d = m_flat.reshape(rows, cols)

    max_block_elems, vmem_limit = _gen_tuned_limits()
    max_block_rows = max(8, (max_block_elems // cols) // 8 * 8)

    if rows < 8:
        block_rows = rows              # block == full dim -> always legal
    else:
        # Aim for >= ~8 grid steps so DMA in/out pipeline and v7x can shard
        # the row loop across its two TensorCores; keep multiple of 8.
        target = max(8, _round_up(pl.cdiv(rows, 8), 8))
        block_rows = min(max_block_rows, target)
    grid_rows = pl.cdiv(rows, block_rows)   # ragged last block handled by Pallas

    itemsize = jnp.dtype(tensor.dtype).itemsize
    cost = pl.CostEstimate(
        flops=total,
        transcendentals=0,
        bytes_accessed=total * (2 * itemsize + 1),  # x in + mask in + out
    )

    out2d = pl.pallas_call(
        _masked_fill_kernel,
        out_shape=jax.ShapeDtypeStruct((rows, cols), tensor.dtype),
        grid=(grid_rows,),
        in_specs=[
            pl.BlockSpec((block_rows, cols), lambda i: (i, 0)),
            pl.BlockSpec((block_rows, cols), lambda i: (i, 0)),
        ],
        out_specs=pl.BlockSpec((block_rows, cols), lambda i: (i, 0)),
        compiler_params=pltpu.CompilerParams(
            dimension_semantics=("parallel",),
            vmem_limit_bytes=vmem_limit,
        ),
        cost_estimate=cost,
    )(x2d, m2d)

    out_flat = out2d.reshape(-1)
    if pad:
        out_flat = out_flat[:total]
    # NOTE: no input_output_aliases — output must not clobber the caller's
    # live `tensor` (non-inplace semantics; inplace variant returns the same
    # values anyway).
    return out_flat.reshape(orig_shape)


def _reference(tensor, mask):
    return jnp.where(mask, jnp.asarray(_FILL_VALUE, dtype=tensor.dtype),
                     tensor + tensor)


if __name__ == "__main__":
    key = jax.random.PRNGKey(0)

    # Shape consistent with the test module (NCHW-like); flat size divides a
    # candidate width exactly -> no pad / slice passes.
    k_x, k_m, k_x2, k_m2 = jax.random.split(key, 4)
    x = jax.random.normal(k_x, (2, 4, 16, 16), dtype=jnp.float32)
    mask = jax.random.bernoulli(k_m, p=0.3, shape=(2, 4, 16, 16))

    out = jax.block_until_ready(masked_fill_double(x, mask))
    ref = _reference(x, mask)
    assert out.shape == ref.shape and out.dtype == ref.dtype
    assert bool(jnp.all(out == ref)), "mismatch vs reference (aligned case)"

    # Second case exercising the rare unaligned/pad path.
    x2 = jax.random.normal(k_x2, (3, 5, 7, 9), dtype=jnp.float32)
    mask2 = jax.random.bernoulli(k_m2, p=0.5, shape=(3, 5, 7, 9))

    out2 = jax.block_until_ready(masked_fill_double(x2, mask2))
    ref2 = _reference(x2, mask2)
    assert out2.shape == ref2.shape and out2.dtype == ref2.dtype
    assert bool(jnp.all(out2 == ref2)), "mismatch vs reference (padded case)"

    print("KERNEL_OK")
</pallas_src>

<mosaic_0001>
module attributes {stable_mosaic.version = 11 : i64} {
  func.func @_masked_fill_kernel(%arg0: i32, %arg1: memref<8x256xf32, #tpu.memory_space<vmem>>, %arg2: memref<8x256xi32, #tpu.memory_space<vmem>>, %arg3: memref<8x256xf32, #tpu.memory_space<vmem>>) attributes {dimension_semantics = [#tpu.dimension_semantics<parallel>], iteration_bounds = array<i64: 1>, scalar_prefetch = 0 : i64, scratch_operands = 0 : i64, tpu.core_type = #tpu.core_type<tc>, window_params = [{transform_indices = @transform_0, window_bounds = array<i64: 8, 256>}, {transform_indices = @transform_1, window_bounds = array<i64: 8, 256>}, {transform_indices = @transform_2, window_bounds = array<i64: 8, 256>}]} {
    %c0 = arith.constant 0 : index
    %c0_0 = arith.constant 0 : index
    %0 = vector.load %arg1[%c0, %c0_0] : memref<8x256xf32, #tpu.memory_space<vmem>>, vector<8x256xf32>
    %c0_1 = arith.constant 0 : index
    %c0_2 = arith.constant 0 : index
    %1 = vector.load %arg2[%c0_1, %c0_2] : memref<8x256xi32, #tpu.memory_space<vmem>>, vector<8x256xi32>
    %cst = arith.constant dense<0> : vector<8x256xi32>
    %2 = arith.cmpi ne, %1, %cst : vector<8x256xi32>
    %3 = arith.addf %0, %0 : vector<8x256xf32>
    %cst_3 = arith.constant 4.200000e+01 : f32
    %4 = vector.broadcast %cst_3 : f32 to vector<8x256xf32>
    %5 = arith.select %2, %4, %3 : vector<8x256xi1>, vector<8x256xf32>
    %c0_4 = arith.constant 0 : index
    %c0_5 = arith.constant 0 : index
    %6 = vector.load %arg3[%c0_4, %c0_5] : memref<8x256xf32, #tpu.memory_space<vmem>>, vector<8x256xf32>
    tpu.vector_store %arg3[%c0_4, %c0_5], %5 {strides = array<i32>} : memref<8x256xf32, #tpu.memory_space<vmem>>, vector<8x256xf32>,
    return
  }
  func.func @transform_0(%arg0: i32) -> (i32, i32) {
    %c0_i32 = arith.constant 0 : i32
    %c0_i32_0 = arith.constant 0 : i32
    return %arg0, %c0_i32 : i32, i32
  }
  func.func @transform_1(%arg0: i32) -> (i32, i32) {
    %c0_i32 = arith.constant 0 : i32
    %c0_i32_0 = arith.constant 0 : i32
    return %arg0, %c0_i32 : i32, i32
  }
  func.func @transform_2(%arg0: i32) -> (i32, i32) {
    %c0_i32 = arith.constant 0 : i32
    %c0_i32_0 = arith.constant 0 : i32
    return %arg0, %c0_i32 : i32, i32
  }
}

</mosaic_0001>

<bundles_post_ra>
// kernel: tpu_custom_call.1
= control target key start
LH: loop header
LB: loop body
LE: loop exit
PB: predicated region body
PF: predicated region fallthrough
CT: control target
= control target key end

     0   :  { %s103_s0 = inlined_call_operand.vmem [shape: f32[8,256], index: 0, kind: input, shape index: {}]   ;;  %s104_s1 = inlined_call_operand.vmem [shape: s32[8,256], index: 1, kind: input, shape index: {}]   ;;  %s105_s2 = inlined_call_operand.hbm [shape: f32[8,256], index: 2, kind: output, shape index: {}]  }
   0x1   :  { %v12_v0 = vld [vmem:[%s103_s0] sm:$0xff]  ;;  %v13_v2 = vld [vmem:[%s103_s0 + $0x8] sm:$0xff] }
   0x2   :  { %v14_v1 = vld [vmem:[%s104_s1] sm:$0xff]  ;;  %v18_v3 = vadd.f32 %v12_v0, %v12_v0  ;;  %v15_v4 = vld [vmem:[%s104_s1 + $0x8] sm:$0xff]  ;;  %v19_v5 = vadd.f32 %v13_v2, %v13_v2 }
   0x3   :  { %vm16_vm0 = vcmp.ne.s32.totalorder %v14_v1, 0 }
   0x4   :  { %7 = vsyncpa [#allocation3], 0  ;;  %s63_s17 = smov [#allocation2]   ;;  %vm17_vm1 = vcmp.ne.s32.totalorder %v15_v4, 0  ;;  %v20_v6 = vsel %vm16_vm0, 42.0, %v18_v3 }
   0x5   :  { %s30_s18 = sshll.u32 %s63_s17, 4  ;;  %v21_v7 = vsel %vm17_vm1, 42.0, %v19_v5  ;;  %22 = vst [vmem:[#allocation2] sm:$0xff] %v20_v6  ;;  %s31_s18 = int_to_ptr.vmem [resolvable:$true] %s30_s18 }
   0x6   :  { %23 = vst [vmem:[#allocation2 + $0x8] sm:$0xff] %v21_v7  ;;  %s39_s19 = scalar_lea.vmem %s31_s18, 256  ;;  %p44_p1 = scmp.lt.s32.totalorder %s31_s18, %s31_s18 }
   0x7   :  { %p40_p0 = scmp.ne.s32.totalorder %s31_s18, %s39_s19  ;;  %p45_p2 = scmp.lt.s32.totalorder %s39_s19, %s39_s19 }
   0x9   :  { %p46_p3 = por %p45_p2, %p44_p1 }
   0xb   :  { %p47_p4 = pnand %p46_p3, %p40_p0 }
   0xd   :  { %50 = shalt.err (!%p47_p4)
}
   0xe   :  { %s51_s1 = scalar_lea.hbm %s105_s2, 256 }
   0xf   :  { %p52_p5 = scmp.ne.s32.totalorder %s105_s2, %s51_s1  ;;  %p55_p6 = scmp.lt.u32.totalorder %s51_s1, %s105_s2 }
  0x11   :  { %p57_p7 = pnand %p55_p6, %p52_p5 }
  0x13   :  { %60 = shalt.err (!%p57_p7)
}
  0x14   :  { %33 = dma.vmem_to_hbm [thread:$0]  %s31_s18, 256, %s105_s2, [#allocation3]  }
  0x15   :  { %61 = dma.done.wait [#allocation3], 256  }
  0x16   :  { %62 = vsyncadd [#allocation3], 4294967040 }
  0x17   :  { %37 = vsyncpa [#allocation3], 1 }

</bundles_post_ra>
